<compile_context>
chip_gen: v5e
topology: v5e:2x2
jax: 0.10.0
libtpu: 0.0.40
codegen_flags: <defaults>
</compile_context>

<pallas_src>
import functools

import jax
import jax.numpy as jnp
from jax import lax
from jax.experimental import pallas as pl
from jax.experimental.pallas import tpu as pltpu


def _convt_block_kernel(w_ref, p_ref, s_ref, b_ref, o_ref):
    # w_ref: (4*C_out, 4*C_in) bf16   p_ref: (4*C_in, TM) bf16
    # s_ref: (4*C_out, 1) f32 (BN scale)  b_ref: (4*C_out, 1) f32 (folded bias)
    # o_ref: (4*C_out, TM) f32
    acc = jnp.dot(w_ref[...], p_ref[...],
                  preferred_element_type=jnp.float32)          # MXU, f32 accum
    y = acc * s_ref[...] + b_ref[...]                           # f32 BN scale + folded bias
    o_ref[...] = jnp.maximum(y, 0.2 * y).astype(o_ref.dtype)    # LeakyReLU(0.2)


def _round_up(v, m):
    return ((v + m - 1) // m) * m


def _pick_tm(M, tm_max=2048, max_waste_frac=0.05):
    """Pick a lane tile TM (multiple of 128): prefer low last-tile padding
    waste, >= 2 grid steps (keeps both v7x TensorCores busy), then the largest
    tile (amortizes the ~0.35us/step grid overhead)."""
    limit = min(tm_max, _round_up(M, 128))
    best_key, best = None, None
    for t in range(128, limit + 1, 128):
        padded = _round_up(M, t)
        waste_ok = (padded - M) <= max_waste_frac * padded or t == 128
        key = (0 if waste_ok else 1, 0 if padded // t >= 2 else 1, -t)
        if best_key is None or key < best_key:
            best_key, best = key, (t, padded)
    return best


def _subpixel_weight(w_conv, C_out, C_in):
    """Build the combined sub-pixel weight (4*C_out, 4*C_in).

    Rows ordered (r, c, co) over output phases oh=2a+r, ow=2b+c.
    Cols ordered (dy, dx, ci) over the 2x2 input window x[a+dy, b+dx].
    Valid (kh, kw) = (1 - r + 2*dy, 1 - c + 2*dx); out-of-range taps are 0.
    """
    zeros = jnp.zeros((C_out, C_in), w_conv.dtype)
    rows = []
    for r in range(2):
        for c in range(2):
            cols = []
            for dy in range(2):
                for dx in range(2):
                    kh = 1 - r + 2 * dy
                    kw = 1 - c + 2 * dx
                    if 0 <= kh < 3 and 0 <= kw < 3:
                        cols.append(w_conv[:, :, kh, kw])      # (C_out, C_in)
                    else:
                        cols.append(zeros)
            rows.append(jnp.concatenate(cols, axis=1))          # (C_out, 4*C_in)
    return jnp.concatenate(rows, axis=0)                        # (4*C_out, 4*C_in)


@functools.partial(jax.jit, static_argnames=("k", "s", "p", "op", "tm_max"))
def conv_transpose_block_forward(x, convt_w, convt_b, bn_gamma, bn_beta,
                                 bn_mean, bn_var, *, k=3, s=2, p=1, op=1,
                                 eps=1e-5, tm_max=2048):
    """x: (N, C_in, H, W) float32 (NCHW).  convt_w: (C_in, C_out, k, k)
    (PyTorch ConvTranspose2d layout).  Returns (N, C_out, 2H, 2W) float32."""
    # Sub-pixel decomposition below is specific to the module defaults.
    assert k == 3 and s == 2 and p == 1 and op == 1, \
        "only the ConvTransposeBlock defaults (k=3, s=2, p=1, op=1) are supported"
    N, C_in, H, W = x.shape
    C_out = convt_w.shape[1]
    OH, OW = 2 * H, 2 * W

    # Equivalent stride-1 conv weight: swap (in,out), flip spatially.
    w_conv = jnp.flip(convt_w.transpose(1, 0, 2, 3), axis=(2, 3))   # (C_out, C_in, 3, 3)
    w_sub = _subpixel_weight(w_conv, C_out, C_in).astype(jnp.bfloat16)

    # Eval-mode BatchNorm folded with the conv bias; kept in f32 (applied in
    # the kernel epilogue, broadcast over the 4 phases).
    scale_co = bn_gamma / jnp.sqrt(bn_var + eps)                    # (C_out,)
    bias_co = (convt_b - bn_mean) * scale_co + bn_beta              # (C_out,)
    scale4 = jnp.tile(scale_co, 4).reshape(4 * C_out, 1).astype(jnp.float32)
    bias4 = jnp.tile(bias_co, 4).reshape(4 * C_out, 1).astype(jnp.float32)

    # 2x2 im2col of the (bf16) input: patches (4*C_in, M), M = N*H*W on lanes.
    # K ordered (dy, dx, ci); M ordered (n, a, b).  High-side zero pad of 1
    # supplies the x[a+1,*]/x[*,b+1] taps at the image border.
    xb = x.astype(jnp.bfloat16)
    xpad = jnp.pad(xb, ((0, 0), (0, 0), (0, 1), (0, 1)))
    shifts = [xpad[:, :, dy:dy + H, dx:dx + W]                      # (N, C_in, H, W)
              for dy in range(2) for dx in range(2)]
    patches = jnp.stack(shifts, axis=0)                             # (4, N, C_in, H, W)
    patches = patches.transpose(0, 2, 1, 3, 4).reshape(4 * C_in, N * H * W)

    M = N * H * W
    TM, Mp = _pick_tm(M, tm_max=tm_max)
    if Mp != M:
        patches = jnp.pad(patches, ((0, 0), (0, Mp - M)))

    out = pl.pallas_call(
        _convt_block_kernel,
        out_shape=jax.ShapeDtypeStruct((4 * C_out, Mp), jnp.float32),
        grid_spec=pltpu.PrefetchScalarGridSpec(
            num_scalar_prefetch=0,
            grid=(Mp // TM,),
            in_specs=[
                pl.BlockSpec((4 * C_out, 4 * C_in), lambda i: (0, 0)),  # weight (resident)
                pl.BlockSpec((4 * C_in, TM), lambda i: (0, i)),         # patch tile
                pl.BlockSpec((4 * C_out, 1), lambda i: (0, 0)),         # BN scale (resident)
                pl.BlockSpec((4 * C_out, 1), lambda i: (0, 0)),         # bias (resident)
            ],
            out_specs=pl.BlockSpec((4 * C_out, TM), lambda i: (0, i)),
        ),
        compiler_params=pltpu.CompilerParams(
            dimension_semantics=("parallel",),
            vmem_limit_bytes=32 * 1024 * 1024),
    )(w_sub, patches, scale4, bias4)

    # Pixel-shuffle the 4 phases back into NCHW.
    # TODO(synk): fold this interleave into the kernel's output layout so XLA
    #             does not re-read/re-write the f32 output.
    out = out[:, :M]                                                # drop lane padding
    out = out.reshape(2, 2, C_out, N, H, W)                         # (r, c, co, n, a, b)
    out = out.transpose(3, 2, 4, 0, 5, 1)                           # (n, co, a, r, b, c)
    return out.reshape(N, C_out, OH, OW)


def _reference_forward(x, convt_w, convt_b, bn_gamma, bn_beta, bn_mean, bn_var,
                       k=3, s=2, p=1, op=1, eps=1e-5):
    # PyTorch ConvTranspose2d == lhs-dilated conv with swapped/flipped weight.
    w_conv = jnp.flip(convt_w.transpose(1, 0, 2, 3), axis=(2, 3))
    y = lax.conv_general_dilated(
        x, w_conv, window_strides=(1, 1),
        padding=[(k - 1 - p, k - 1 - p + op), (k - 1 - p, k - 1 - p + op)],
        lhs_dilation=(s, s),
        dimension_numbers=("NCHW", "OIHW", "NCHW"))
    y = y + convt_b.reshape(1, -1, 1, 1)
    inv_std = 1.0 / jnp.sqrt(bn_var + eps)
    y = (y - bn_mean.reshape(1, -1, 1, 1)) * (bn_gamma * inv_std).reshape(1, -1, 1, 1) \
        + bn_beta.reshape(1, -1, 1, 1)
    return jnp.maximum(y, 0.2 * y)


if __name__ == "__main__":
    key = jax.random.PRNGKey(0)
    k_x, k_w, k_b, k_g, k_be, k_m, k_v = jax.random.split(key, 7)

    N, C_in, H, W = 2, 4, 16, 16
    C_out, K = 8, 3

    x = jax.random.normal(k_x, (N, C_in, H, W), dtype=jnp.float32)
    # PyTorch ConvTranspose2d weight layout: (in_ch, out_ch, kH, kW)
    convt_w = jax.random.normal(k_w, (C_in, C_out, K, K), dtype=jnp.float32) * 0.1
    convt_b = jax.random.normal(k_b, (C_out,), dtype=jnp.float32) * 0.1
    bn_gamma = 1.0 + 0.1 * jax.random.normal(k_g, (C_out,), dtype=jnp.float32)
    bn_beta = 0.1 * jax.random.normal(k_be, (C_out,), dtype=jnp.float32)
    bn_mean = 0.1 * jax.random.normal(k_m, (C_out,), dtype=jnp.float32)
    bn_var = 1.0 + 0.1 * jnp.abs(jax.random.normal(k_v, (C_out,), dtype=jnp.float32))

    out = conv_transpose_block_forward(x, convt_w, convt_b, bn_gamma, bn_beta,
                                       bn_mean, bn_var)
    out = jax.block_until_ready(out)

    ref = _reference_forward(x, convt_w, convt_b, bn_gamma, bn_beta,
                             bn_mean, bn_var)
    OH = (H - 1) * 2 - 2 * 1 + 3 + 1
    assert out.shape == (N, C_out, OH, OH), out.shape
    # bf16 matmul operands (f32 accumulation, f32 BN scale/bias epilogue).
    assert jnp.allclose(out, ref, atol=3e-2, rtol=3e-2), \
        float(jnp.max(jnp.abs(out - ref)))

    print("KERNEL_OK")
</pallas_src>

<mosaic_0001>
module attributes {stable_mosaic.version = 11 : i64} {
  func.func @_convt_block_kernel(%arg0: i32, %arg1: memref<32x16xbf16, #tpu.memory_space<vmem>>, %arg2: memref<16x256xbf16, #tpu.memory_space<vmem>>, %arg3: memref<32x1xf32, #tpu.memory_space<vmem>>, %arg4: memref<32x1xf32, #tpu.memory_space<vmem>>, %arg5: memref<32x256xf32, #tpu.memory_space<vmem>>) attributes {dimension_semantics = [#tpu.dimension_semantics<parallel>], iteration_bounds = array<i64: 2>, scalar_prefetch = 0 : i64, scratch_operands = 0 : i64, tpu.core_type = #tpu.core_type<tc>, window_params = [{pipeline_mode = #tpu.pipeline_mode<synchronous>, transform_indices = @transform_0, window_bounds = array<i64: 32, 16>}, {transform_indices = @transform_1, window_bounds = array<i64: 16, 256>}, {pipeline_mode = #tpu.pipeline_mode<synchronous>, transform_indices = @transform_2, window_bounds = array<i64: 32, 1>}, {pipeline_mode = #tpu.pipeline_mode<synchronous>, transform_indices = @transform_3, window_bounds = array<i64: 32, 1>}, {transform_indices = @transform_4, window_bounds = array<i64: 32, 256>}]} {
    %c0 = arith.constant 0 : index
    %c0_0 = arith.constant 0 : index
    %0 = vector.load %arg1[%c0, %c0_0] : memref<32x16xbf16, #tpu.memory_space<vmem>>, vector<32x16xbf16>
    %c0_1 = arith.constant 0 : index
    %c0_2 = arith.constant 0 : index
    %1 = vector.load %arg2[%c0_1, %c0_2] : memref<16x256xbf16, #tpu.memory_space<vmem>>, vector<16x256xbf16>
    %cst = arith.constant dense<0.000000e+00> : vector<32x256xf32>
    %2 = tpu.matmul %0, %1, %cst {dimension_numbers = #tpu.dot_dimension_numbers<[1], [0], [0], [1], [0, 0, 1, 1], [], []>} : vector<32x16xbf16>, vector<16x256xbf16>, vector<32x256xf32> -> vector<32x256xf32>
    %c0_3 = arith.constant 0 : index
    %c0_4 = arith.constant 0 : index
    %3 = vector.load %arg3[%c0_3, %c0_4] : memref<32x1xf32, #tpu.memory_space<vmem>>, vector<32x1xf32>
    %4 = vector.broadcast %3 : vector<32x1xf32> to vector<32x256xf32>
    %5 = arith.mulf %2, %4 : vector<32x256xf32>
    %c0_5 = arith.constant 0 : index
    %c0_6 = arith.constant 0 : index
    %6 = vector.load %arg4[%c0_5, %c0_6] : memref<32x1xf32, #tpu.memory_space<vmem>>, vector<32x1xf32>
    %7 = vector.broadcast %6 : vector<32x1xf32> to vector<32x256xf32>
    %8 = arith.addf %5, %7 : vector<32x256xf32>
    %cst_7 = arith.constant 2.000000e-01 : f32
    %9 = vector.broadcast %cst_7 : f32 to vector<32x256xf32>
    %10 = arith.mulf %9, %8 : vector<32x256xf32>
    %11 = arith.maximumf %8, %10 : vector<32x256xf32>
    %c0_8 = arith.constant 0 : index
    %c0_9 = arith.constant 0 : index
    %12 = vector.load %arg5[%c0_8, %c0_9] : memref<32x256xf32, #tpu.memory_space<vmem>>, vector<32x256xf32>
    tpu.vector_store %arg5[%c0_8, %c0_9], %11 {strides = array<i32>} : memref<32x256xf32, #tpu.memory_space<vmem>>, vector<32x256xf32>,
    return
  }
  func.func @transform_0(%arg0: i32) -> (i32, i32) {
    %c0_i32 = arith.constant 0 : i32
    %c0_i32_0 = arith.constant 0 : i32
    %c0_i32_1 = arith.constant 0 : i32
    return %c0_i32, %c0_i32_0 : i32, i32
  }
  func.func @transform_1(%arg0: i32) -> (i32, i32) {
    %c0_i32 = arith.constant 0 : i32
    %c0_i32_0 = arith.constant 0 : i32
    return %c0_i32, %arg0 : i32, i32
  }
  func.func @transform_2(%arg0: i32) -> (i32, i32) {
    %c0_i32 = arith.constant 0 : i32
    %c0_i32_0 = arith.constant 0 : i32
    %c0_i32_1 = arith.constant 0 : i32
    return %c0_i32, %c0_i32_0 : i32, i32
  }
  func.func @transform_3(%arg0: i32) -> (i32, i32) {
    %c0_i32 = arith.constant 0 : i32
    %c0_i32_0 = arith.constant 0 : i32
    %c0_i32_1 = arith.constant 0 : i32
    return %c0_i32, %c0_i32_0 : i32, i32
  }
  func.func @transform_4(%arg0: i32) -> (i32, i32) {
    %c0_i32 = arith.constant 0 : i32
    %c0_i32_0 = arith.constant 0 : i32
    return %c0_i32, %arg0 : i32, i32
  }
}

</mosaic_0001>

<bundles_post_ra>
// kernel: tile.18
= control target key start
LH: loop header
LB: loop body
LE: loop exit
PB: predicated region body
PF: predicated region fallthrough
CT: control target
= control target key end

     0   :  { %s22_s0 = inlined_call_operand.vmem [shape: f32[8], index: 0, kind: input, shape index: {}]   ;;  %s23_s1 = inlined_call_operand.vmem [shape: f32[4,8], index: 1, kind: output, shape index: {}]  }
   0x1   :  { %v4_v0 = vld [vmem:[%s22_s0] ss:$0 sm:$0xff] }
   0x2   :  { %5 = vst [vmem:[%s23_s1] sm:$0xf] %v4_v0 }

// kernel: tile.0
= control target key start
LH: loop header
LB: loop body
LE: loop exit
PB: predicated region body
PF: predicated region fallthrough
CT: control target
= control target key end

     0   :  { %s66_s8 = smov 125   ;;  %s67_s9 = smov 123   ;;  %vm7_vm0 = vcmask 7168   ;;  %s117_s0 = inlined_call_operand.vmem [shape: f32[4,8], index: 0, kind: input, shape index: {}]   ;;  %s118_s1 = inlined_call_operand.vmem [shape: f32[32,1], index: 1, kind: output, shape index: {}]  }
   0x1   :  { %v4_v0 = vld [vmem:[%s117_s0] sm:$0xf]  ;;  %s65_s0 = smov 127   ;;  %s68_s10 = smov 126  }
   0x2   :  { %5 = vst [vmem:[#allocation0] sm:$0xf] %v4_v0  ;;  %s69_s11 = smov 124   ;;  %s70_s12 = smov 122  }
   0x3   :  { %s71_s13 = smov 121  }
   0x9   :  { %v9_v1 = vld [vmem:[#allocation0] sm:$0xf]  }
   0xa   :  { %v21_v2 = vld [vmem:[#allocation0] sm:$0xf]   ;;  %10 = vrot.lane.b32.xlu0 %v9_v1, %s65_s0 }
   0xb   :  { %22 = vrot.lane.b32.xlu1 %v21_v2, %s66_s8  ;;  %v33_v3 = vld [vmem:[#allocation0] sm:$0xf]  }
   0xc   :  { %34 = vrot.lane.b32.xlu2 %v33_v3, %s67_s9  ;;  %v15_v4 = vld [vmem:[#allocation0] sm:$0xf]  }
   0xd   :  { %v27_v5 = vld [vmem:[#allocation0] sm:$0xf]  }
   0xe   :  { %v39_v6 = vld [vmem:[#allocation0] sm:$0xf]  }
   0xf   :  { %v45_v7 = vld [vmem:[#allocation0] sm:$0xf]  }
  0x10   :  { %v6_v8 = vld [vmem:[#allocation0] sm:$0xf]  }
  0x11   :  { %8 = vst.msk [vmem:[%s118_s1] ss:$8 sm:$0xf] %vm7_vm0, %v6_v8  }
  0x12   :  { %16 = vrot.lane.b32.xlu0 %v15_v4, %s68_s10 }
  0x13   :  { %28 = vrot.lane.b32.xlu1 %v27_v5, %s69_s11 }
  0x14   :  { %40 = vrot.lane.b32.xlu2 %v39_v6, %s70_s12 }
  0x1a   :  { %46 = vrot.lane.b32.xlu0 %v45_v7, %s71_s13 }
  0x66   :  { %v35_v9 = vpop.permute.xlu2 %34  }
  0x67   :  { %55 = vst.msk [vmem:[%s118_s1 + $0x5] ss:$8 sm:$0xf] %vm7_vm0, %v35_v9  }
  0x6e   :  { %v41_v10 = vpop.permute.xlu2 %40  }
  0x6f   :  { %56 = vst.msk [vmem:[%s118_s1 + $0x6] ss:$8 sm:$0xf] %vm7_vm0, %v41_v10  }
  0x7c   :  { %v11_v11 = vpop.permute.xlu0 %10  }
  0x7d   :  { %v23_v12 = vpop.permute.xlu1 %22   ;;  %51 = vst.msk [vmem:[%s118_s1 + $0x1] ss:$8 sm:$0xf] %vm7_vm0, %v11_v11  }
  0x7e   :  { %53 = vst.msk [vmem:[%s118_s1 + $0x3] ss:$8 sm:$0xf] %vm7_vm0, %v23_v12  }
  0x84   :  { %v17_v13 = vpop.permute.xlu0 %16  }
  0x85   :  { %v29_v14 = vpop.permute.xlu1 %28   ;;  %52 = vst.msk [vmem:[%s118_s1 + $0x2] ss:$8 sm:$0xf] %vm7_vm0, %v17_v13  }
  0x86   :  { %54 = vst.msk [vmem:[%s118_s1 + $0x4] ss:$8 sm:$0xf] %vm7_vm0, %v29_v14  }
  0x8c   :  { %v47_v15 = vpop.permute.xlu0 %46  }
  0x8d   :  { %57 = vst.msk [vmem:[%s118_s1 + $0x7] ss:$8 sm:$0xf] %vm7_vm0, %v47_v15  }

// kernel: conv_transpose_block_forward.1
= control target key start
LH: loop header
LB: loop body
LE: loop exit
PB: predicated region body
PF: predicated region fallthrough
CT: control target
= control target key end

     0   :  { %s612_s15 = smov 0   ;;  %s614_s16 = smov 0   ;;  %s724_s0 = inlined_call_operand.vmem [shape: bf16[32,16], index: 0, kind: input, shape index: {}]   ;;  %s725_s1 = inlined_call_operand.vmem [shape: bf16[16,512], index: 1, kind: input, shape index: {}]   ;;  %s726_s2 = inlined_call_operand.vmem [shape: f32[32,1], index: 2, kind: input, shape index: {}]   ;;  %s727_s3 = inlined_call_operand.vmem [shape: f32[32,1], index: 3, kind: input, shape index: {}]   ;;  %s728_s4 = inlined_call_operand.vmem [shape: f32[32,512], index: 4, kind: output, shape index: {}]  }
   0x1   :  { %s616_s17 = smov 0  }
   0x2 LB: > { %s491_s18 = sadd.s32 4294967295, %s584_s17   ;;  %s629_s19 = sadd.s32 1, %s584_s17   ;;  %s584_s17 = sphi %s616_s17, %s732_s17   ;;  %s580_s16 = sphi %s614_s16, %s731_s16   ;;  %s576_s15 = sphi %s612_s15, %s730_s15  }
   0x3   : > { %s39_s20 = ssub.s32 %s584_s17, %s629_s19  ;;  %s42_s21 = sadd.s32 1, %s580_s16 }
   0x4   : > { %p40_p0 = scmp.eq.s32.totalorder %s39_s20, 0  ;;  %p49_p1 = scmp.ne.s32.totalorder %s580_s16, %s576_s15 }
   0x5   : > { %p50_p2 = scmp.eq.s32.totalorder %s584_s17, 0  ;;  %p121_p3 = scmp.eq.s32.totalorder %s491_s18, 1 }
   0x6   : > { %s640_s22 = scalar_select %p40_p0, %s580_s16, %s42_s21  }
   0x7   : > { %p51_p4 = por %p50_p2, %p49_p1  ;;  %p642_p5 = por %p121_p3, %p49_p1 }
   0x8   : > { %p494_p6 = scmp.ge.s32.totalorder %s584_s17, 2 }
   0xa   : > { %152 = sbr.rel (%p494_p6) target bundleno = 21 (0x15), region = 28 }
   0xf   : > { %155 = sbr.rel (!%p51_p4) target bundleno = 21 (0x15), region = 32  ;;  %s157_s24 = sand.u32 (%p51_p4), 1, %s580_s16  }
  0x10   : > { %s526_s25 = sshll.u32 (%p51_p4), %s584_s17, 3  ;;  %s495_s26 = sshll.u32 (%p51_p4), %s157_s24, 4 }
  0x11   : > { %s162_s29 = scalar_lea.vmem (%p51_p4), %s725_s1, %s526_s25  ;;  %s159_s30 = scalar_lea.vmem (%p51_p4), [#allocation2], %s495_s26 }
  0x12   : > { %v193_v0 = vld [vmem:[%s162_s29] sm:$0xff] (%p51_p4)  ;;  %v195_v1 = vld [vmem:[%s162_s29 + $0x10] sm:$0xff] (%p51_p4) }
  0x13   : > { %194 = vst [vmem:[%s159_s30] sm:$0xff] (%p51_p4), %v193_v0 }
  0x14   : > { %196 = vst [vmem:[%s159_s30 + $0x8] sm:$0xff] %v195_v1 }
  0x15 PF: > { %p498_p7 = scmp.ge.s32.totalorder %s584_s17, 1  ;;  %p201_p8 = scmp.lt.s32.totalorder %s584_s17, 3 }
  0x17   : > { %p202_p9 = pnand %p498_p7, %p201_p8 }
  0x18   : > { %s208_s9 = sand.u32 (!%p202_p9), 1, %s576_s15  }
  0x19   : > { %205 = sbr.rel (%p202_p9) target bundleno = 196 (0xc4), region = 70  ;;  %s499_s10 = sshll.u32 (!%p202_p9), %s208_s9, 4 }
  0x1a   : > { %s210_s13 = scalar_lea.vmem (!%p202_p9), [#allocation2], %s499_s10  ;;  %s500_s10 = sshll.u32 (!%p202_p9), %s208_s9, 6 }
  0x1b   : > { %s689_s11 = scalar_lea.vmem (!%p202_p9), [#allocation3], %s500_s10 }
  0x1e   : > { %v308_v2 = vld [vmem:[%s726_s2 + $0x10] sm:$0xff]  ;;  %v306_v3 = vld [vmem:[%s726_s2] sm:$0xff]  ;;  %v586_v4 = vmov 0   ;;  %v530_v7 = vld [vmem:[%s210_s13 + $0x4] sm:$0xf0]  ;;  %vm261_vm0 = vcmask 130048  }
  0x1f   : > { %560 = vset.pattern.permute.xlu1 %v586_v4  ;;  %559 = vset.pattern.permute.xlu0 %v586_v4  ;;  %v338_v5 = vld [vmem:[%s727_s3] sm:$0xff]  ;;  %v513_v10 = vld [vmem:[%s210_s13 + $0x8] sm:$0xf0]  ;;  %v340_v18 = vld [vmem:[%s727_s3 + $0x10] sm:$0xff]  ;;  %s531_s15 = sshll.u32 (%p642_p5), %s491_s18, 4 }
  0x20   : > { %322 = vperm.xlu1 %560, %v308_v2   ;;  %312 = vperm.xlu0 %559, %v306_v3   ;;  %v511_v6 = vld [vmem:[%s210_s13] sm:$0xf]  ;;  %v529_v8 = vld [vmem:[%s210_s13 + $0x4] sm:$0xf]  ;;  %v528_v13 = vld [vmem:[%s724_s0 + $0x8] sm:$0xff]  ;;  %s403_s13 = scalar_lea.vmem (%p642_p5), %s728_s4, %s531_s15 }
  0x21   : > { %561 = vset.pattern.permute.xlu2 %v586_v4  ;;  %v512_v9 = vor.u32 %v530_v7, %v511_v6  ;;  %v516_v11 = vor.u32 %v529_v8, %v513_v10  ;;  %v527_v12 = vld [vmem:[%s724_s0] sm:$0xff]  ;;  %v309_v14 = vld [vmem:[%s726_s2 + $0x18] sm:$0xff]  ;;  %v307_v15 = vld [vmem:[%s726_s2 + $0x8] sm:$0xff] }
  0x22   : > { %344 = vperm.xlu2 %561, %v338_v5   ;;  %v339_v16 = vld [vmem:[%s727_s3 + $0x8] sm:$0xff]  ;;  %v341_v17 = vld [vmem:[%s727_s3 + $0x18] sm:$0xff] }
  0x23   : > { %275 = vmatpush.bf16.msra.mxu0 %v512_v9  ;;  %532 = vmatpush.bf16.msra.mxu2 %v512_v9 }
  0x24   : > { %294 = vmatpush.bf16.msra.mxu1 %v516_v11  ;;  %533 = vmatpush.bf16.msra.mxu3 %v516_v11 }
  0x26   : > { %517 = vmatmul.msk.bf16.vlgmr.msra.gmra.mxu0 %vm261_vm0, %v527_v12  ;;  %518 = vmatmul.msk.bf16.vlgmr.msra.gmra.mxu2 %vm261_vm0, %v528_v13 }
  0x27   : > { %519 = vmatmul.msk.bf16.vlgmr.msra.gmra.mxu1 %vm261_vm0, %v527_v12  ;;  %520 = vmatmul.msk.bf16.vlgmr.msra.gmra.mxu3 %vm261_vm0, %v528_v13 }
  0x28   : > { %327 = vperm.xlu1 %560, %v309_v14   ;;  %317 = vperm.xlu0 %559, %v307_v15  }
  0x2a   : > { %349 = vperm.xlu2 %561, %v339_v16  }
  0x30   : > { %359 = vperm.xlu1 %560, %v341_v17   ;;  %354 = vperm.xlu0 %559, %v340_v18  }
  0x7c   : > { %v345_v22 = vpop.permute.xlu2 %344 }
  0x84   : > { %v350_v44 = vpop.permute.xlu2 %349 }
  0x92   : > { %v313_v19 = vpop.permute.xlu0 %312  ;;  %v323_v20 = vpop.permute.xlu1 %322 }
  0x9a   : > { %v318_v21 = vpop.permute.xlu0 %317  ;;  %v328_v30 = vpop.permute.xlu1 %327 }
  0xa2   : > { %v355_v36 = vpop.permute.xlu0 %354  ;;  %v360_v58 = vpop.permute.xlu1 %359 }
  0xa3   : > { %v277_v23 = vpop.f32.mrf.mxu0 }
  0xa4   : > { %v330_v24 = vmul.f32 %v313_v19, %v277_v23  ;;  %v296_v25 = vpop.f32.mrf.mxu1 }
  0xa5   : > { %v331_v26 = vmul.f32 %v313_v19, %v296_v25 }
  0xa6   : > { %v362_v27 = vadd.f32 %v345_v22, %v330_v24 }
  0xa7   : > { %v363_v28 = vadd.f32 %v345_v22, %v331_v26 }
  0xa8   : > { %v370_v29 = vmul.f32 0.2, %v362_v27 }
  0xa9   : > { %v371_v31 = vmul.f32 0.2, %v363_v28  ;;  %v282_v32 = vpop.f32.mrf.mxu2 }
  0xaa   : > { %v378_v33 = vmax.f32 %v362_v27, %v370_v29  ;;  %v334_v34 = vmul.f32 %v323_v20, %v282_v32  ;;  %v301_v35 = vpop.f32.mrf.mxu3 }
  0xab   : > { %v379_v37 = vmax.f32 %v363_v28, %v371_v31  ;;  %v335_v38 = vmul.f32 %v323_v20, %v301_v35  ;;  %v279_v39 = vpop.f32.mrf.mxu0 }
  0xac   : > { %386 = vst [vmem:[%s689_s11] sm:$0xff] %v378_v33  ;;  %v366_v40 = vadd.f32 %v355_v36, %v334_v34  ;;  %v332_v41 = vmul.f32 %v318_v21, %v279_v39  ;;  %v298_v42 = vpop.f32.mrf.mxu1 }
  0xad   : > { %387 = vst [vmem:[%s689_s11 + $0x8] sm:$0xff] %v379_v37  ;;  %v367_v43 = vadd.f32 %v355_v36, %v335_v38  ;;  %v333_v45 = vmul.f32 %v318_v21, %v298_v42 }
  0xae   : > { %v374_v46 = vmul.f32 0.2, %v366_v40  ;;  %v364_v47 = vadd.f32 %v350_v44, %v332_v41 }
  0xaf   : > { %v375_v48 = vmul.f32 0.2, %v367_v43  ;;  %v365_v49 = vadd.f32 %v350_v44, %v333_v45 }
  0xb0   : > { %v382_v50 = vmax.f32 %v366_v40, %v374_v46  ;;  %v372_v51 = vmul.f32 0.2, %v364_v47 }
  0xb1   : > { %v383_v52 = vmax.f32 %v367_v43, %v375_v48  ;;  %v373_v53 = vmul.f32 0.2, %v365_v49  ;;  %v284_v54 = vpop.f32.mrf.mxu2 }
  0xb2   : > { %390 = vst [vmem:[%s689_s11 + $0x20] sm:$0xff] %v382_v50  ;;  %v380_v55 = vmax.f32 %v364_v47, %v372_v51  ;;  %v336_v56 = vmul.f32 %v328_v30, %v284_v54  ;;  %v303_v57 = vpop.f32.mrf.mxu3 }
  0xb3   : > { %391 = vst [vmem:[%s689_s11 + $0x28] sm:$0xff] %v383_v52  ;;  %v381_v59 = vmax.f32 %v365_v49, %v373_v53  ;;  %v337_v60 = vmul.f32 %v328_v30, %v303_v57  ;;  %v416_v3 = vld [vmem:[%s689_s11] sm:$0xff] (%p642_p5) }
  0xb4   : > { %388 = vst [vmem:[%s689_s11 + $0x10] sm:$0xff] %v380_v55  ;;  %v368_v61 = vadd.f32 %v360_v58, %v336_v56  ;;  %v418_v4 = vld [vmem:[%s689_s11 + $0x8] sm:$0xff] (%p642_p5) }
  0xb5   : > { %389 = vst [vmem:[%s689_s11 + $0x18] sm:$0xff] %v381_v59  ;;  %v369_v62 = vadd.f32 %v360_v58, %v337_v60 }
  0xb6   : > { %v376_v63 = vmul.f32 0.2, %v368_v61  ;;  %417 = vst [vmem:[%s403_s13] sm:$0xff] (%p642_p5), %v416_v3 }
  0xb7   : > { %v377_v0 = vmul.f32 0.2, %v369_v62  ;;  %400 = sbr.rel (!%p642_p5) target bundleno = 196 (0xc4), region = 78  ;;  %419 = vst [vmem:[%s403_s13 + $0x8] sm:$0xff] (%p642_p5), %v418_v4 }
  0xb8   : > { %v384_v1 = vmax.f32 %v368_v61, %v376_v63 }
  0xb9   : > { %v385_v2 = vmax.f32 %v369_v62, %v377_v0  ;;  %v424_v7 = vld [vmem:[%s689_s11 + $0x20] sm:$0xff] (%p642_p5) }
  0xba   : > { %392 = vst [vmem:[%s689_s11 + $0x30] sm:$0xff] %v384_v1  ;;  %v426_v8 = vld [vmem:[%s689_s11 + $0x28] sm:$0xff] (%p642_p5) }
  0xbb   : > { %393 = vst [vmem:[%s689_s11 + $0x38] sm:$0xff] %v385_v2  ;;  %v420_v5 = vld [vmem:[%s689_s11 + $0x10] sm:$0xff] (%p642_p5) }
  0xbc   : > { %v422_v6 = vld [vmem:[%s689_s11 + $0x18] sm:$0xff]  ;;  %421 = vst [vmem:[%s403_s13 + $0x20] sm:$0xff] %v420_v5 }
  0xbd   : > { %423 = vst [vmem:[%s403_s13 + $0x28] sm:$0xff] %v422_v6 }
  0xbe   : > { %425 = vst [vmem:[%s403_s13 + $0x40] sm:$0xff] %v424_v7 }
  0xbf   : > { %427 = vst [vmem:[%s403_s13 + $0x48] sm:$0xff] %v426_v8 }
  0xc1   : > { %v428_v9 = vld [vmem:[%s689_s11 + $0x30] sm:$0xff] }
  0xc2   : > { %v430_v10 = vld [vmem:[%s689_s11 + $0x38] sm:$0xff]  ;;  %429 = vst [vmem:[%s403_s13 + $0x60] sm:$0xff] %v428_v9 }
  0xc3   : > { %431 = vst [vmem:[%s403_s13 + $0x68] sm:$0xff] %v430_v10 }
  0xc4 PF: > { %p11_p10 = scmp.ge.s32.totalorder %s629_s19, 4   ;;  %s730_s15 = smov %s580_s16 }
  0xc5   : > { %s731_s16 = smov %s640_s22  ;;  %s732_s17 = smov %s629_s19 }
  0xc6   :  { %13 = sbr.rel (!%p11_p10) target bundleno = 2 (0x2), region = 132 }

</bundles_post_ra>
